<compile_context>
chip_gen: v5e
topology: v5e:2x2
jax: 0.10.0
libtpu: 0.0.40
codegen_flags: <defaults>
</compile_context>

<pallas_src>
import jax
import jax.numpy as jnp
from jax.experimental import pallas as pl
from jax.experimental.pallas import tpu as pltpu

LANE = 128
SUBLANE_BF16 = 16


def _round_up(x, m):
    return (x + m - 1) // m * m


# ----------------------------- Pallas kernel -------------------------------

def mlp_kernel(x_ref, w0_ref, w_ref, b_ref, out_ref):
    """x_ref: (TB, F) bf16   w0_ref: (F, P) bf16   w_ref: (3, P, P) bf16
       b_ref: (4, P) f32     out_ref: (TB, P) f32."""
    h = jnp.dot(x_ref[...], w0_ref[...], preferred_element_type=jnp.float32)
    h = jnp.maximum(h + b_ref[0:1, :], 0.0).astype(jnp.bfloat16)
    h = jnp.dot(h, w_ref[0], preferred_element_type=jnp.float32)
    h = jnp.maximum(h + b_ref[1:2, :], 0.0).astype(jnp.bfloat16)
    h = jnp.dot(h, w_ref[1], preferred_element_type=jnp.float32)
    h = jnp.maximum(h + b_ref[2:3, :], 0.0).astype(jnp.bfloat16)
    out_ref[...] = (
        jnp.dot(h, w_ref[2], preferred_element_type=jnp.float32) + b_ref[3:4, :])


def mlp_forward(x, w0, w_stack, b_stack, num_targets, block_batch=1024):
    """x: (B, F) float32. Returns (B, num_targets) float32."""
    B, F = x.shape
    P = w_stack.shape[-1]
    x = x.astype(jnp.bfloat16)

    # Batch tile: multiple of 16 (bf16 sublane packing) when tiling; capped so
    # the grid has >= 2 steps when B allows -> both v7x TensorCores get work.
    if B > block_batch:
        TB = max(SUBLANE_BF16, (block_batch // SUBLANE_BF16) * SUBLANE_BF16)
    else:
        half = _round_up(pl.cdiv(B, 2), SUBLANE_BF16)
        TB = half if half < B else B
    grid = (pl.cdiv(B, TB),)

    out = pl.pallas_call(
        mlp_kernel,
        out_shape=jax.ShapeDtypeStruct((B, P), jnp.float32),
        grid=grid,
        in_specs=[
            pl.BlockSpec((TB, F), lambda i: (i, 0)),       # activations: tiled, native width
            pl.BlockSpec((F, P), lambda i: (0, 0)),        # first-layer weight: resident
            pl.BlockSpec((3, P, P), lambda i: (0, 0, 0)),  # remaining weights: resident
            pl.BlockSpec((4, P), lambda i: (0, 0)),        # biases: resident
        ],
        out_specs=pl.BlockSpec((TB, P), lambda i: (i, 0)),
        compiler_params=pltpu.CompilerParams(
            dimension_semantics=("parallel",)),            # v7x: shard tiles over 2 TCs
    )(x, w0, w_stack, b_stack)
    return out[:, :num_targets]


# --------------------------- parameter folding ------------------------------

def bn_fold(gamma, beta, mean, var, eps=1e-5):
    scale = gamma / jnp.sqrt(var + eps)
    shift = beta - mean * scale
    return scale, shift


def weight_norm_fold(v, g):
    # PyTorch weight_norm (dim=0): W = g * v / ||v||_row ; v is (out, in).
    norm = jnp.sqrt(jnp.sum(v * v, axis=1, keepdims=True))
    w = g[:, None] * v / norm
    return w.T  # (in, out) so the kernel computes x @ W


def fold_layer(bn, lin):
    gamma, beta, mean, var = bn
    v, g, b = lin
    s, h = bn_fold(gamma, beta, mean, var)
    W = weight_norm_fold(v, g)          # (in, out)
    W_f = s[:, None] * W                # BN scale folded into W rows
    b_f = h @ W + b                     # BN shift folded into bias
    return W_f, b_f


def pack_params(folded, pad_to):
    """First layer kept at native input width; layers 2..4 packed (3, P, P).
    Padded rows/cols are zero, so the folding stays exact."""
    (W0, b0), rest = folded[0], folded[1:]
    F = W0.shape[0]
    w0 = jnp.zeros((F, pad_to), jnp.float32).at[:, :W0.shape[1]].set(W0)
    n = len(rest)
    w_stack = jnp.zeros((n, pad_to, pad_to), jnp.float32)
    b_stack = jnp.zeros((n + 1, pad_to), jnp.float32)
    b_stack = b_stack.at[0, :b0.shape[0]].set(b0)
    for idx, (W, b) in enumerate(rest):
        di, do = W.shape
        w_stack = w_stack.at[idx, :di, :do].set(W)
        b_stack = b_stack.at[idx + 1, :do].set(b)
    return w0.astype(jnp.bfloat16), w_stack.astype(jnp.bfloat16), b_stack


# ----------------------------- test scaffolding -----------------------------

def make_raw_params(key, num_features, hidden1, hidden2, num_targets):
    dims = [(num_features, hidden1), (hidden1, hidden2),
            (hidden2, hidden2), (hidden2, num_targets)]
    bns, lins = [], []
    for (din, dout) in dims:
        key, k1, k2, k3, k4, k5, k6, k7 = jax.random.split(key, 8)
        gamma = 1.0 + 0.1 * jax.random.normal(k1, (din,), jnp.float32)
        beta = 0.1 * jax.random.normal(k2, (din,), jnp.float32)
        mean = 0.1 * jax.random.normal(k3, (din,), jnp.float32)
        var = jnp.abs(jax.random.normal(k4, (din,), jnp.float32)) + 0.5
        v = 0.1 * jax.random.normal(k5, (dout, din), jnp.float32)
        g = 1.0 + 0.1 * jax.random.normal(k6, (dout,), jnp.float32)
        b = 0.1 * jax.random.normal(k7, (dout,), jnp.float32)
        bns.append((gamma, beta, mean, var))
        lins.append((v, g, b))
    return bns, lins


def mlp_reference(x, bns, lins, eps=1e-5):
    # Pure-JAX f32 reference using raw (unfolded) params; dropout is identity
    # in eval mode.
    for i, (bn, lin) in enumerate(zip(bns, lins)):
        gamma, beta, mean, var = bn
        v, g, b = lin
        x = (x - mean) / jnp.sqrt(var + eps) * gamma + beta
        W = g[:, None] * v / jnp.sqrt(jnp.sum(v * v, axis=1, keepdims=True))
        x = x @ W.T + b
        if i < 3:
            x = jnp.maximum(x, 0.0)
    return x


if __name__ == "__main__":
    num_features, num_targets = 32, 16
    hidden1, hidden2 = 64, 32
    batch = 8

    key = jax.random.PRNGKey(0)
    kx, kp = jax.random.split(key)
    x = jax.random.normal(kx, (batch, num_features), jnp.float32)

    bns, lins = make_raw_params(kp, num_features, hidden1, hidden2, num_targets)
    folded = [fold_layer(bn, lin) for bn, lin in zip(bns, lins)]
    P = _round_up(max(hidden1, hidden2, num_targets), LANE)
    w0, w_stack, b_stack = pack_params(folded, P)

    out = mlp_forward(x, w0, w_stack, b_stack, num_targets)
    out = jax.block_until_ready(out)
    ref = mlp_reference(x, bns, lins)
    assert out.shape == (batch, num_targets)
    # bf16 inputs/weights through 4 chained matmuls -> loosened tolerance.
    assert jnp.allclose(out, ref, atol=8e-2, rtol=8e-2)

    # Exercise the ragged multi-tile path (TB=32, grid=2, masked last tile).
    x2 = jax.random.normal(jax.random.PRNGKey(1), (40, num_features), jnp.float32)
    out2 = jax.block_until_ready(mlp_forward(x2, w0, w_stack, b_stack, num_targets))
    ref2 = mlp_reference(x2, bns, lins)
    assert jnp.allclose(out2, ref2, atol=8e-2, rtol=8e-2)

    print("KERNEL_OK")
</pallas_src>

<mosaic_0001>
module attributes {stable_mosaic.version = 11 : i64} {
  func.func @mlp_kernel(%arg0: i32, %arg1: memref<8x32xbf16, #tpu.memory_space<vmem>>, %arg2: memref<32x128xbf16, #tpu.memory_space<vmem>>, %arg3: memref<3x128x128xbf16, #tpu.memory_space<vmem>>, %arg4: memref<4x128xf32, #tpu.memory_space<vmem>>, %arg5: memref<8x128xf32, #tpu.memory_space<vmem>>) attributes {dimension_semantics = [#tpu.dimension_semantics<parallel>], iteration_bounds = array<i64: 1>, scalar_prefetch = 0 : i64, scratch_operands = 0 : i64, tpu.core_type = #tpu.core_type<tc>, window_params = [{transform_indices = @transform_0, window_bounds = array<i64: 8, 32>}, {pipeline_mode = #tpu.pipeline_mode<synchronous>, transform_indices = @transform_1, window_bounds = array<i64: 32, 128>}, {pipeline_mode = #tpu.pipeline_mode<synchronous>, transform_indices = @transform_2, window_bounds = array<i64: 3, 128, 128>}, {pipeline_mode = #tpu.pipeline_mode<synchronous>, transform_indices = @transform_3, window_bounds = array<i64: 4, 128>}, {transform_indices = @transform_4, window_bounds = array<i64: 8, 128>}]} {
    %c0 = arith.constant 0 : index
    %c0_0 = arith.constant 0 : index
    %0 = vector.load %arg1[%c0, %c0_0] : memref<8x32xbf16, #tpu.memory_space<vmem>>, vector<8x32xbf16>
    %c0_1 = arith.constant 0 : index
    %c0_2 = arith.constant 0 : index
    %1 = vector.load %arg2[%c0_1, %c0_2] : memref<32x128xbf16, #tpu.memory_space<vmem>>, vector<32x128xbf16>
    %cst = arith.constant dense<0.000000e+00> : vector<8x128xf32>
    %2 = tpu.matmul %0, %1, %cst {dimension_numbers = #tpu.dot_dimension_numbers<[1], [0], [0], [1], [0, 0, 1, 1], [], []>} : vector<8x32xbf16>, vector<32x128xbf16>, vector<8x128xf32> -> vector<8x128xf32>
    %c0_3 = arith.constant 0 : index
    %c0_4 = arith.constant 0 : index
    %3 = vector.load %arg4[%c0_3, %c0_4] : memref<4x128xf32, #tpu.memory_space<vmem>>, vector<1x128xf32>
    %4 = vector.broadcast %3 : vector<1x128xf32> to vector<8x128xf32>
    %5 = arith.addf %2, %4 : vector<8x128xf32>
    %cst_5 = arith.constant 0.000000e+00 : f32
    %6 = vector.broadcast %cst_5 : f32 to vector<8x128xf32>
    %7 = arith.maximumf %5, %6 : vector<8x128xf32>
    %8 = arith.truncf %7 : vector<8x128xf32> to vector<8x128xbf16>
    %c0_6 = arith.constant 0 : index
    %c0_7 = arith.constant 0 : index
    %c0_8 = arith.constant 0 : index
    %9 = vector.load %arg3[%c0_6, %c0_7, %c0_8] : memref<3x128x128xbf16, #tpu.memory_space<vmem>>, vector<1x128x128xbf16>
    %10 = vector.shape_cast %9 : vector<1x128x128xbf16> to vector<128x128xbf16>
    %cst_9 = arith.constant dense<0.000000e+00> : vector<8x128xf32>
    %11 = tpu.matmul %8, %10, %cst_9 {dimension_numbers = #tpu.dot_dimension_numbers<[1], [0], [0], [1], [0, 0, 1, 1], [], []>} : vector<8x128xbf16>, vector<128x128xbf16>, vector<8x128xf32> -> vector<8x128xf32>
    %c1 = arith.constant 1 : index
    %c0_10 = arith.constant 0 : index
    %12 = vector.load %arg4[%c1, %c0_10] : memref<4x128xf32, #tpu.memory_space<vmem>>, vector<1x128xf32>
    %13 = vector.broadcast %12 : vector<1x128xf32> to vector<8x128xf32>
    %14 = arith.addf %11, %13 : vector<8x128xf32>
    %cst_11 = arith.constant 0.000000e+00 : f32
    %15 = vector.broadcast %cst_11 : f32 to vector<8x128xf32>
    %16 = arith.maximumf %14, %15 : vector<8x128xf32>
    %17 = arith.truncf %16 : vector<8x128xf32> to vector<8x128xbf16>
    %c1_12 = arith.constant 1 : index
    %c0_13 = arith.constant 0 : index
    %c0_14 = arith.constant 0 : index
    %18 = vector.load %arg3[%c1_12, %c0_13, %c0_14] : memref<3x128x128xbf16, #tpu.memory_space<vmem>>, vector<1x128x128xbf16>
    %19 = vector.shape_cast %18 : vector<1x128x128xbf16> to vector<128x128xbf16>
    %cst_15 = arith.constant dense<0.000000e+00> : vector<8x128xf32>
    %20 = tpu.matmul %17, %19, %cst_15 {dimension_numbers = #tpu.dot_dimension_numbers<[1], [0], [0], [1], [0, 0, 1, 1], [], []>} : vector<8x128xbf16>, vector<128x128xbf16>, vector<8x128xf32> -> vector<8x128xf32>
    %c2 = arith.constant 2 : index
    %c0_16 = arith.constant 0 : index
    %21 = vector.load %arg4[%c2, %c0_16] : memref<4x128xf32, #tpu.memory_space<vmem>>, vector<1x128xf32>
    %22 = vector.broadcast %21 : vector<1x128xf32> to vector<8x128xf32>
    %23 = arith.addf %20, %22 : vector<8x128xf32>
    %cst_17 = arith.constant 0.000000e+00 : f32
    %24 = vector.broadcast %cst_17 : f32 to vector<8x128xf32>
    %25 = arith.maximumf %23, %24 : vector<8x128xf32>
    %26 = arith.truncf %25 : vector<8x128xf32> to vector<8x128xbf16>
    %c2_18 = arith.constant 2 : index
    %c0_19 = arith.constant 0 : index
    %c0_20 = arith.constant 0 : index
    %27 = vector.load %arg3[%c2_18, %c0_19, %c0_20] : memref<3x128x128xbf16, #tpu.memory_space<vmem>>, vector<1x128x128xbf16>
    %28 = vector.shape_cast %27 : vector<1x128x128xbf16> to vector<128x128xbf16>
    %cst_21 = arith.constant dense<0.000000e+00> : vector<8x128xf32>
    %29 = tpu.matmul %26, %28, %cst_21 {dimension_numbers = #tpu.dot_dimension_numbers<[1], [0], [0], [1], [0, 0, 1, 1], [], []>} : vector<8x128xbf16>, vector<128x128xbf16>, vector<8x128xf32> -> vector<8x128xf32>
    %c3 = arith.constant 3 : index
    %c0_22 = arith.constant 0 : index
    %30 = vector.load %arg4[%c3, %c0_22] : memref<4x128xf32, #tpu.memory_space<vmem>>, vector<1x128xf32>
    %31 = vector.broadcast %30 : vector<1x128xf32> to vector<8x128xf32>
    %32 = arith.addf %29, %31 : vector<8x128xf32>
    %c0_23 = arith.constant 0 : index
    %c0_24 = arith.constant 0 : index
    %33 = vector.load %arg5[%c0_23, %c0_24] : memref<8x128xf32, #tpu.memory_space<vmem>>, vector<8x128xf32>
    tpu.vector_store %arg5[%c0_23, %c0_24], %32 {strides = array<i32>} : memref<8x128xf32, #tpu.memory_space<vmem>>, vector<8x128xf32>,
    return
  }
  func.func @transform_0(%arg0: i32) -> (i32, i32) {
    %c0_i32 = arith.constant 0 : i32
    %c0_i32_0 = arith.constant 0 : i32
    return %arg0, %c0_i32 : i32, i32
  }
  func.func @transform_1(%arg0: i32) -> (i32, i32) {
    %c0_i32 = arith.constant 0 : i32
    %c0_i32_0 = arith.constant 0 : i32
    %c0_i32_1 = arith.constant 0 : i32
    return %c0_i32, %c0_i32_0 : i32, i32
  }
  func.func @transform_2(%arg0: i32) -> (i32, i32, i32) {
    %c0_i32 = arith.constant 0 : i32
    %c0_i32_0 = arith.constant 0 : i32
    %c0_i32_1 = arith.constant 0 : i32
    %c0_i32_2 = arith.constant 0 : i32
    return %c0_i32, %c0_i32_0, %c0_i32_1 : i32, i32, i32
  }
  func.func @transform_3(%arg0: i32) -> (i32, i32) {
    %c0_i32 = arith.constant 0 : i32
    %c0_i32_0 = arith.constant 0 : i32
    %c0_i32_1 = arith.constant 0 : i32
    return %c0_i32, %c0_i32_0 : i32, i32
  }
  func.func @transform_4(%arg0: i32) -> (i32, i32) {
    %c0_i32 = arith.constant 0 : i32
    %c0_i32_0 = arith.constant 0 : i32
    return %arg0, %c0_i32 : i32, i32
  }
}

</mosaic_0001>

<bundles_post_ra>
// kernel: tpu_custom_call.1
= control target key start
LH: loop header
LB: loop body
LE: loop exit
PB: predicated region body
PF: predicated region fallthrough
CT: control target
= control target key end

     0   :  { %9 = vsyncpa [#allocation3], 0  ;;  %s696_s0 = inlined_call_operand.hbm [shape: bf16[8,32], index: 0, kind: input, shape index: {}]   ;;  %s697_s1 = inlined_call_operand.hbm [shape: bf16[32,128], index: 1, kind: input, shape index: {}]   ;;  %s698_s2 = inlined_call_operand.hbm [shape: bf16[3,128,128], index: 2, kind: input, shape index: {}]   ;;  %s699_s3 = inlined_call_operand.hbm [shape: f32[4,128], index: 3, kind: input, shape index: {}]   ;;  %s700_s4 = inlined_call_operand.hbm [shape: f32[8,128], index: 4, kind: output, shape index: {}]  }
   0x1   :  { %10 = vsyncpa [#allocation6], 0 }
   0x2   :  { %11 = vsyncpa [#allocation9], 0  ;;  %s28_s17 = sshll.u32 %s697_s1, 4  ;;  %s29_s17 = int_to_ptr.hbm [resolvable:$true] %s28_s17 }
   0x3   :  { %12 = vsyncpa [#allocation4], 0  ;;  %s649_s18 = smov [#allocation5]   ;;  %s18_s22 = sshll.u32 %s696_s0, 4  ;;  %s19_s22 = int_to_ptr.hbm [resolvable:$true] %s18_s22 }
   0x4   :  { %s30_s19 = sshll.u32 %s649_s18, 4  ;;  %s650_s23 = smov 64   ;;  %s31_s19 = int_to_ptr.vmem [resolvable:$true] %s30_s19 }
   0x5   :  { %s651_s24 = smov 4   ;;  %s652_s25 = smov [#allocation2]  }
   0x6   :  { %36 = dma.hbm_to_vmem [thread:$0]  %s29_s17, 256, %s31_s19, [#allocation6], %s650_s23, %s650_s23, %s651_s24  }
   0x7   :  { %s20_s26 = sshll.u32 %s652_s25, 4  ;;  %s41_s29 = sshll.u32 %s698_s2, 4  ;;  %s21_s26 = int_to_ptr.vmem [resolvable:$true] %s20_s26  ;;  %s42_s29 = int_to_ptr.hbm [resolvable:$true] %s41_s29 }
   0x8   :  { %23 = dma.hbm_to_vmem [thread:$0]  %s19_s22, 64, %s21_s26, [#allocation3]  }
   0x9   :  { %s55_s5 = sshll.u32 %s699_s3, 4  ;;  %s653_s6 = smov [#allocation7]   ;;  %s56_s5 = int_to_ptr.hbm [resolvable:$true] %s55_s5 }
   0xa   :  { %s43_s7 = sshll.u32 %s653_s6, 4  ;;  %s654_s0 = smov [#allocation8]   ;;  %s44_s7 = int_to_ptr.vmem [resolvable:$true] %s43_s7 }
   0xb   :  { %49 = dma.hbm_to_vmem [thread:$0]  %s42_s29, 3072, %s44_s7, [#allocation6], %s650_s23, %s650_s23, %s651_s24  }
   0xc   :  { %s57_s8 = sshll.u32 %s654_s0, 4  ;;  %s58_s8 = int_to_ptr.vmem [resolvable:$true] %s57_s8 }
   0xd   :  { %60 = dma.hbm_to_vmem [thread:$0]  %s56_s5, 64, %s58_s8, [#allocation9]  }
   0xe   :  { %641 = dma.done.wait [#allocation3], 64  }
   0xf   :  { %642 = vsyncadd [#allocation3], 4294967232 }
  0x10   :  { %643 = dma.done.wait [#allocation6], 3328  }
  0x11   :  { %644 = vsyncadd [#allocation6], 4294963968 }
  0x12   :  { %645 = dma.done.wait [#allocation9], 64  }
  0x13   :  { %646 = vsyncadd [#allocation9], 4294967232  ;;  %v485_v0 = vld [vmem:[#allocation5 + $0x8] sm:$0xff]  ;;  %v484_v2 = vld [vmem:[#allocation5] sm:$0xff]  ;;  %vm97_vm0 = vcmask 261120   ;;  %s655_s2 = smov [#allocation10]  }
  0x14   :  { %v493_v1 = vld [vmem:[#allocation7 + $0x38] sm:$0xff]  ;;  %107 = vmatpush.bf16.msra.mxu0 %v485_v0  ;;  %v492_v3 = vld [vmem:[#allocation7 + $0x30] sm:$0xff]  ;;  %v78_v4 = vld [vmem:[#allocation2] sm:$0xf]  ;;  %s365_s3 = sshll.u32 %s655_s2, 4  ;;  %s367_s11 = sshll.u32 %s700_s4, 4  ;;  %s366_s3 = int_to_ptr.vmem [resolvable:$true] %s365_s3  ;;  %s368_s11 = int_to_ptr.hbm [resolvable:$true] %s367_s11 }
  0x15   :  { %182 = vmatpush.bf16.msra.mxu1 %v493_v1  ;;  %v491_v5 = vld [vmem:[#allocation7 + $0x28] sm:$0xff]  ;;  %v490_v6 = vld [vmem:[#allocation7 + $0x20] sm:$0xff]  ;;  %v489_v7 = vld [vmem:[#allocation7 + $0x18] sm:$0xff] }
  0x16   :  { %v488_v8 = vld [vmem:[#allocation7 + $0x10] sm:$0xff]  ;;  %v487_v9 = vld [vmem:[#allocation7 + $0x8] sm:$0xff]  ;;  %v486_v10 = vld [vmem:[#allocation7] sm:$0xff] }
  0x17   :  { %v501_v11 = vld [vmem:[#allocation7 + $0x78] sm:$0xff]  ;;  %v500_v12 = vld [vmem:[#allocation7 + $0x70] sm:$0xff]  ;;  %v499_v13 = vld [vmem:[#allocation7 + $0x68] sm:$0xff] }
  0x18   :  { %108 = vmatpush.bf16.msra.mxu0 %v484_v2  ;;  %264 = vmatpush.bf16.msra.mxu2 %v501_v11  ;;  %v498_v14 = vld [vmem:[#allocation7 + $0x60] sm:$0xff]  ;;  %v497_v15 = vld [vmem:[#allocation7 + $0x58] sm:$0xff]  ;;  %v496_v16 = vld [vmem:[#allocation7 + $0x50] sm:$0xff] }
  0x19   :  { %183 = vmatpush.bf16.msra.mxu1 %v492_v3  ;;  %v517_v17 = vld [vmem:[#allocation8] ss:$0 sm:$0xff]  ;;  %v495_v23 = vld [vmem:[#allocation7 + $0x48] sm:$0xff]  ;;  %v509_v25 = vld [vmem:[#allocation7 + $0xb8] sm:$0xff] }
  0x1a   :  { %v494_v24 = vld [vmem:[#allocation7 + $0x40] sm:$0xff]  ;;  %346 = vmatpush.bf16.msra.mxu3 %v509_v25  ;;  %v508_v26 = vld [vmem:[#allocation7 + $0xb0] sm:$0xff]  ;;  %v507_v27 = vld [vmem:[#allocation7 + $0xa8] sm:$0xff] }
  0x1b   :  { %387 = vmatmul.msk.bf16.vlgmr.msra.gmra.mxu0 %vm97_vm0, %v78_v4  ;;  %v506_v28 = vld [vmem:[#allocation7 + $0xa0] sm:$0xff]  ;;  %v505_v29 = vld [vmem:[#allocation7 + $0x98] sm:$0xff]  ;;  %v504_v30 = vld [vmem:[#allocation7 + $0x90] sm:$0xff] }
  0x1c   :  { %265 = vmatpush.bf16.msra.mxu2 %v500_v12  ;;  %v518_v31 = vld [vmem:[#allocation8 + $0x1] ss:$0 sm:$0xff]  ;;  %v503_v37 = vld [vmem:[#allocation7 + $0x88] sm:$0xff]  ;;  %v519_v39 = vld [vmem:[#allocation8 + $0x2] ss:$0 sm:$0xff] }
  0x1d   :  { %184 = vmatpush.bf16.msra.mxu1 %v491_v5  ;;  %v502_v38 = vld [vmem:[#allocation7 + $0x80] sm:$0xff] }
  0x1e   :  { %347 = vmatpush.bf16.msra.mxu3 %v508_v26  ;;  %v520_v45 = vld [vmem:[#allocation8 + $0x3] ss:$0 sm:$0xff] }
  0x20   :  { %266 = vmatpush.bf16.msra.mxu2 %v499_v13 }
  0x21   :  { %185 = vmatpush.bf16.msra.mxu1 %v490_v6 }
  0x22   :  { %348 = vmatpush.bf16.msra.mxu3 %v507_v27 }
  0x24   :  { %267 = vmatpush.bf16.msra.mxu2 %v498_v14 }
  0x25   :  { %186 = vmatpush.bf16.msra.mxu1 %v489_v7 }
  0x26   :  { %349 = vmatpush.bf16.msra.mxu3 %v506_v28 }
  0x28   :  { %268 = vmatpush.bf16.msra.mxu2 %v497_v15 }
  0x29   :  { %187 = vmatpush.bf16.msra.mxu1 %v488_v8 }
  0x2a   :  { %350 = vmatpush.bf16.msra.mxu3 %v505_v29 }
  0x2c   :  { %269 = vmatpush.bf16.msra.mxu2 %v496_v16 }
  0x2d   :  { %188 = vmatpush.bf16.msra.mxu1 %v487_v9 }
  0x2e   :  { %351 = vmatpush.bf16.msra.mxu3 %v504_v30 }
  0x30   :  { %270 = vmatpush.bf16.msra.mxu2 %v495_v23 }
  0x31   :  { %189 = vmatpush.bf16.msra.mxu1 %v486_v10 }
  0x32   :  { %352 = vmatpush.bf16.msra.mxu3 %v503_v37 }
  0x34   :  { %271 = vmatpush.bf16.msra.mxu2 %v494_v24 }
  0x36   :  { %353 = vmatpush.bf16.msra.mxu3 %v502_v38 }
  0x98   :  { %v110_v18 = vpop.f32.mrf.mxu0 }
  0x99   :  { %v111_v19 = vadd.f32 %v517_v17, %v110_v18 }
  0x9b   :  { %v114_v20 = vmax.f32 %v111_v19, 0.0 }
  0x9d   :  { %v115_v21 = vpack.c.bf16 %v114_v20, %v114_v20 }
  0x9f   :  { %190 = vmatmul.bf16.vlgmr.msra.gmra.mxu1 %v115_v21 }
  0xa0   :  { %v112_v22 = vpop.f32.mrf.mxu0 }
 0x11c   :  { %v191_v32 = vpop.f32.mrf.mxu1 }
 0x11d   :  { %v192_v33 = vadd.f32 %v518_v31, %v191_v32 }
 0x11f   :  { %v195_v34 = vmax.f32 %v192_v33, 0.0 }
 0x121   :  { %v196_v35 = vpack.c.bf16 %v195_v34, %v195_v34 }
 0x123   :  { %272 = vmatmul.bf16.vlgmr.msra.gmra.mxu2 %v196_v35 }
 0x124   :  { %v193_v36 = vpop.f32.mrf.mxu1 }
 0x1a6   :  { %v273_v40 = vpop.f32.mrf.mxu2 }
 0x1a7   :  { %v274_v41 = vadd.f32 %v519_v39, %v273_v40 }
 0x1a9   :  { %v277_v42 = vmax.f32 %v274_v41, 0.0 }
 0x1ab   :  { %v278_v43 = vpack.c.bf16 %v277_v42, %v277_v42 }
 0x1ad   :  { %354 = vmatmul.bf16.vlgmr.msra.gmra.mxu3 %v278_v43 }
 0x1ae   :  { %v275_v44 = vpop.f32.mrf.mxu2 }
 0x230   :  { %v355_v46 = vpop.f32.mrf.mxu3 }
 0x231   :  { %v356_v47 = vadd.f32 %v520_v45, %v355_v46 }
 0x233   :  { %359 = vst [vmem:[#allocation10] sm:$0xff] %v356_v47 }
 0x234   :  { %370 = dma.vmem_to_hbm [thread:$0]  %s366_s3, 128, %s368_s11, [#allocation4]  }
 0x238   :  { %v357_v48 = vpop.f32.mrf.mxu3 }
 0x239   :  { %647 = dma.done.wait [#allocation4], 128  }
 0x23a   :  { %648 = vsyncadd [#allocation4], 4294967168 }
 0x23b   :  { %375 = vsyncpa [#allocation3], 1 }
 0x23c   :  { %376 = vsyncpa [#allocation6], 1 }
 0x23d   :  { %377 = vsyncpa [#allocation9], 1 }
 0x23e   :  { %378 = vsyncpa [#allocation4], 1 }

</bundles_post_ra>
